<compile_context>
chip_gen: v7x
topology: tpu7x:2x2x1
jax: 0.10.0
libtpu: 0.0.40
codegen_flags: <defaults>
</compile_context>

<pallas_src>
import functools

import jax
import jax.numpy as jnp
from jax import lax
from jax.experimental import pallas as pl
from jax.experimental.pallas import tpu as pltpu


def _round_up(x, m):
    return (x + m - 1) // m * m


def _pick_th(H, th_target):
    """Largest divisor of H that is a multiple of 128 and <= th_target.
    Falls back to full H only for small hidden dims (H < 128 or H % 128 != 0)."""
    if H < 128 or H % 128 != 0:
        return H
    th = min(_round_up(th_target, 128), H)
    th = (th // 128) * 128
    while H % th != 0:
        th -= 128
    return th


def _vmem_limit_bytes(tm, D, th):
    """Scoped-VMEM budget derived from the double-buffered tile footprint."""
    per_step = (
        tm * D * 2        # x tile (bf16)
        + tm * 4          # gate column (f32)
        + D * th * 2      # W1 chunk (bf16)
        + th * 4          # b1 chunk (f32)
        + th * D * 2      # W2 chunk (bf16)
        + tm * D * 4      # f32 output block (accumulator)
    )
    need = 2 * per_step + (4 << 20)          # double buffering + slack
    return int(min(max(need, 32 << 20), 100 << 20))


# ----------------------------------------------------------------------------
# Kernel: expert FFNs + gated combine, accumulated over (expert, H-chunk) axes
# directly into the (resident) f32 output block.
# ----------------------------------------------------------------------------
def moe_expert_kernel(x_ref, gt_ref, w1_ref, b1_ref, w2_ref, o_ref):
    # Grid: (token tile i, expert e, hidden chunk h); e and h are reductions.
    e = pl.program_id(1)
    h = pl.program_id(2)

    @pl.when((e == 0) & (h == 0))
    def _():
        o_ref[...] = jnp.zeros_like(o_ref)

    g = gt_ref[0]                                          # (tm, 1) f32 gate

    # relu(x @ W1[:, h-chunk] + b1[h-chunk]); gate folded in before the bf16
    # cast: g * (hid @ W2) == (g * hid) @ W2 exactly.
    hid = jnp.dot(x_ref[...], w1_ref[0],                   # (tm, th) f32
                  preferred_element_type=jnp.float32)
    hid = jnp.maximum(hid + b1_ref[0], 0.0)
    hid = (g * hid).astype(w2_ref.dtype)                   # (tm, th) bf16

    o_ref[...] += jnp.dot(hid, w2_ref[0],                  # (tm, D) f32
                          preferred_element_type=jnp.float32)


def moe_experts(x_bf16, gates_t, w1, b1, w2, *, tm, th):
    """x_bf16: (T_pad, D) bf16, gates_t: (E, T_pad, 1) f32,
    w1: (E, D, H) bf16, b1: (E, 1, H) f32, w2: (E, H, D) bf16."""
    T_pad, D = x_bf16.shape
    E, _, H = w1.shape

    grid = (T_pad // tm, E, H // th)
    return pl.pallas_call(
        moe_expert_kernel,
        out_shape=jax.ShapeDtypeStruct((T_pad, D), jnp.float32),
        grid_spec=pltpu.PrefetchScalarGridSpec(
            num_scalar_prefetch=0,
            grid=grid,
            in_specs=[
                pl.BlockSpec((tm, D), lambda i, e, h: (i, 0)),        # x tile
                pl.BlockSpec((1, tm, 1), lambda i, e, h: (e, i, 0)),  # gate col
                pl.BlockSpec((1, D, th), lambda i, e, h: (e, 0, h)),  # W1 chunk
                pl.BlockSpec((1, 1, th), lambda i, e, h: (e, 0, h)),  # b1 chunk
                pl.BlockSpec((1, th, D), lambda i, e, h: (e, h, 0)),  # W2 chunk
            ],
            out_specs=pl.BlockSpec((tm, D), lambda i, e, h: (i, 0)),
        ),
        compiler_params=pltpu.CompilerParams(
            # Token-tile axis is parallel (megacore); expert and hidden-chunk
            # axes carry the resident output accumulator -> arbitrary.
            dimension_semantics=("parallel", "arbitrary", "arbitrary"),
            vmem_limit_bytes=_vmem_limit_bytes(tm, D, th),
        ),
    )(x_bf16, gates_t, w1, b1, w2)


# ----------------------------------------------------------------------------
# Full MoE forward (matches moe_layer(x, op_info=...) semantics)
# ----------------------------------------------------------------------------
@functools.partial(jax.jit, static_argnames=("top_k", "tm", "th"))
def moe_forward(x, wg, w1, b1, w2, b2, *, top_k=2, tm=512, th=512):
    # op_info={'token_id': 0, 'seq_len': 1} is routing metadata; it does not
    # change the math and is ignored here.
    B, S, D = x.shape
    E, _, H = w1.shape
    T = B * S
    tokens = x.reshape(T, D)

    # ---- Router + top-k gating in plain JAX (tiny work, XLA fuses it). ----
    probs = jax.nn.softmax(jnp.dot(tokens, wg,
                                   preferred_element_type=jnp.float32), axis=-1)
    _, top_idx = lax.top_k(probs, top_k)                       # (T, k)
    mask = jnp.sum(jax.nn.one_hot(top_idx, E, dtype=probs.dtype), axis=1)
    gates = probs * mask
    gates = gates / jnp.sum(gates, axis=-1, keepdims=True)     # (T, E) f32

    # b2 contribution folded here: sum_e g_e * b2_e  == gates @ b2.
    bias_comb = jnp.dot(gates, b2.reshape(E, D),
                        preferred_element_type=jnp.float32)    # (T, D) f32

    # ---- Tile sizing / padding. ----
    tm_eff = min(tm, _round_up(T, 8))
    tm_eff = _round_up(tm_eff, 8)
    T_pad = _round_up(T, tm_eff)
    th_eff = _pick_th(H, th)

    pad = T_pad - T
    tokens_p = jnp.pad(tokens, ((0, pad), (0, 0)))
    gates_p = jnp.pad(gates, ((0, pad), (0, 0)))               # padded rows: gate 0

    # Gates transposed to (E, T_pad, 1) so each expert's gate column lands as a
    # (tm, 1) block in the kernel (no in-kernel lane select / reduce).
    gates_t = jnp.transpose(gates_p, (1, 0))[:, :, None]

    # bf16 activations/weights, f32 biases and accumulation.
    x_bf16 = tokens_p.astype(jnp.bfloat16)
    w1_bf16 = w1.astype(jnp.bfloat16)
    w2_bf16 = w2.astype(jnp.bfloat16)
    b1_f32 = b1.reshape(E, 1, H).astype(jnp.float32)

    out_pad = moe_experts(x_bf16, gates_t, w1_bf16, b1_f32, w2_bf16,
                          tm=tm_eff, th=th_eff)                # (T_pad, D) f32
    return (out_pad[:T] + bias_comb).reshape(B, S, D)


if __name__ == "__main__":
    # Small, MoE-consistent shapes.
    B, S, D, H, E, TOP_K = 2, 8, 32, 64, 4, 2

    key = jax.random.PRNGKey(0)
    kx, kg, k1, kb1, k2, kb2 = jax.random.split(key, 6)

    x = jax.random.normal(kx, (B, S, D), dtype=jnp.float32)
    wg = jax.random.normal(kg, (D, E), dtype=jnp.float32) * (1.0 / jnp.sqrt(D))
    w1 = jax.random.normal(k1, (E, D, H), dtype=jnp.float32) * (1.0 / jnp.sqrt(D))
    b1 = jax.random.normal(kb1, (E, 1, H), dtype=jnp.float32) * 0.01
    w2 = jax.random.normal(k2, (E, H, D), dtype=jnp.float32) * (1.0 / jnp.sqrt(H))
    b2 = jax.random.normal(kb2, (E, 1, D), dtype=jnp.float32) * 0.01

    out = moe_forward(x, wg, w1, b1, w2, b2, top_k=TOP_K)
    jax.block_until_ready(out)

    # Pure-JAX reference of the same MoE math, with matching bf16 quantization
    # points (gate folded into the hidden activation before the bf16 cast,
    # f32 accumulation, b2 combined via gates @ b2).
    tokens = x.reshape(B * S, D)
    probs_ref = jax.nn.softmax(tokens @ wg, axis=-1)
    _, ti = lax.top_k(probs_ref, TOP_K)
    mask_ref = jnp.sum(jax.nn.one_hot(ti, E, dtype=probs_ref.dtype), axis=1)
    gates_ref = probs_ref * mask_ref
    gates_ref = gates_ref / jnp.sum(gates_ref, axis=-1, keepdims=True)

    tok_q = tokens.astype(jnp.bfloat16).astype(jnp.float32)
    w1_q = w1.astype(jnp.bfloat16).astype(jnp.float32)
    w2_q = w2.astype(jnp.bfloat16).astype(jnp.float32)
    h_e = jnp.einsum("td,edh->teh", tok_q, w1_q) + b1.reshape(1, E, H)
    h_e = jnp.maximum(h_e, 0.0)
    h_e = (gates_ref[:, :, None] * h_e).astype(jnp.bfloat16).astype(jnp.float32)
    y_e = jnp.einsum("teh,ehd->ted", h_e, w2_q)
    ref = (jnp.sum(y_e, axis=1)
           + gates_ref @ b2.reshape(E, D)).reshape(B, S, D)

    err = float(jnp.max(jnp.abs(out - ref)))
    assert jnp.allclose(out, ref, atol=1e-2, rtol=1e-2), err
    print("KERNEL_OK")
</pallas_src>

<mosaic_0001>
module attributes {stable_mosaic.version = 11 : i64} {
  func.func @moe_expert_kernel(%arg0: i32, %arg1: i32, %arg2: i32, %arg3: memref<16x32xbf16, #tpu.memory_space<vmem>>, %arg4: memref<1x16x1xf32, #tpu.memory_space<vmem>>, %arg5: memref<1x32x64xbf16, #tpu.memory_space<vmem>>, %arg6: memref<1x1x64xf32, #tpu.memory_space<vmem>>, %arg7: memref<1x64x32xbf16, #tpu.memory_space<vmem>>, %arg8: memref<16x32xf32, #tpu.memory_space<vmem>>) attributes {dimension_semantics = [#tpu.dimension_semantics<parallel>, #tpu.dimension_semantics<arbitrary>, #tpu.dimension_semantics<arbitrary>], iteration_bounds = array<i64: 1, 4, 1>, scalar_prefetch = 0 : i64, scratch_operands = 0 : i64, tpu.core_type = #tpu.core_type<tc>, window_params = [{transform_indices = @transform_0, window_bounds = array<i64: 16, 32>}, {transform_indices = @transform_1, window_bounds = array<i64: 1, 16, 1>}, {transform_indices = @transform_2, window_bounds = array<i64: 1, 32, 64>}, {transform_indices = @transform_3, window_bounds = array<i64: 1, 1, 64>}, {transform_indices = @transform_4, window_bounds = array<i64: 1, 64, 32>}, {transform_indices = @transform_5, window_bounds = array<i64: 16, 32>}]} {
    %c0_i32 = arith.constant 0 : i32
    %0 = arith.cmpi eq, %arg1, %c0_i32 : i32
    %c0_i32_0 = arith.constant 0 : i32
    %1 = arith.cmpi eq, %arg2, %c0_i32_0 : i32
    %2 = arith.andi %0, %1 : i1
    %3 = arith.extui %2 : i1 to i32
    %c0_i32_1 = arith.constant 0 : i32
    %4 = arith.cmpi ne, %3, %c0_i32_1 : i32
    scf.if %4 {
      %cst_21 = arith.constant 0.000000e+00 : f32
      %26 = vector.broadcast %cst_21 : f32 to vector<16x32xf32>
      %c0_22 = arith.constant 0 : index
      %c0_23 = arith.constant 0 : index
      %27 = vector.load %arg8[%c0_22, %c0_23] : memref<16x32xf32, #tpu.memory_space<vmem>>, vector<16x32xf32>
      tpu.vector_store %arg8[%c0_22, %c0_23], %26 {strides = array<i32>} : memref<16x32xf32, #tpu.memory_space<vmem>>, vector<16x32xf32>,
    } else {
    }
    %c0 = arith.constant 0 : index
    %c0_2 = arith.constant 0 : index
    %c0_3 = arith.constant 0 : index
    %5 = vector.load %arg4[%c0, %c0_2, %c0_3] : memref<1x16x1xf32, #tpu.memory_space<vmem>>, vector<1x16x1xf32>
    %6 = vector.shape_cast %5 : vector<1x16x1xf32> to vector<16x1xf32>
    %c0_4 = arith.constant 0 : index
    %c0_5 = arith.constant 0 : index
    %7 = vector.load %arg3[%c0_4, %c0_5] : memref<16x32xbf16, #tpu.memory_space<vmem>>, vector<16x32xbf16>
    %c0_6 = arith.constant 0 : index
    %c0_7 = arith.constant 0 : index
    %c0_8 = arith.constant 0 : index
    %8 = vector.load %arg5[%c0_6, %c0_7, %c0_8] : memref<1x32x64xbf16, #tpu.memory_space<vmem>>, vector<1x32x64xbf16>
    %9 = vector.shape_cast %8 : vector<1x32x64xbf16> to vector<32x64xbf16>
    %cst = arith.constant dense<0.000000e+00> : vector<16x64xf32>
    %10 = tpu.matmul %7, %9, %cst {dimension_numbers = #tpu.dot_dimension_numbers<[1], [0], [0], [1], [0, 0, 1, 1], [], []>} : vector<16x32xbf16>, vector<32x64xbf16>, vector<16x64xf32> -> vector<16x64xf32>
    %c0_9 = arith.constant 0 : index
    %c0_10 = arith.constant 0 : index
    %c0_11 = arith.constant 0 : index
    %11 = vector.load %arg6[%c0_9, %c0_10, %c0_11] : memref<1x1x64xf32, #tpu.memory_space<vmem>>, vector<1x1x64xf32>
    %12 = vector.shape_cast %11 : vector<1x1x64xf32> to vector<1x64xf32>
    %13 = vector.broadcast %12 : vector<1x64xf32> to vector<16x64xf32>
    %14 = arith.addf %10, %13 : vector<16x64xf32>
    %cst_12 = arith.constant 0.000000e+00 : f32
    %15 = vector.broadcast %cst_12 : f32 to vector<16x64xf32>
    %16 = arith.maximumf %14, %15 : vector<16x64xf32>
    %17 = vector.broadcast %6 : vector<16x1xf32> to vector<16x64xf32>
    %18 = arith.mulf %17, %16 : vector<16x64xf32>
    %19 = arith.truncf %18 : vector<16x64xf32> to vector<16x64xbf16>
    %c0_13 = arith.constant 0 : index
    %c0_14 = arith.constant 0 : index
    %20 = vector.load %arg8[%c0_13, %c0_14] : memref<16x32xf32, #tpu.memory_space<vmem>>, vector<16x32xf32>
    %c0_15 = arith.constant 0 : index
    %c0_16 = arith.constant 0 : index
    %c0_17 = arith.constant 0 : index
    %21 = vector.load %arg7[%c0_15, %c0_16, %c0_17] : memref<1x64x32xbf16, #tpu.memory_space<vmem>>, vector<1x64x32xbf16>
    %22 = vector.shape_cast %21 : vector<1x64x32xbf16> to vector<64x32xbf16>
    %cst_18 = arith.constant dense<0.000000e+00> : vector<16x32xf32>
    %23 = tpu.matmul %19, %22, %cst_18 {dimension_numbers = #tpu.dot_dimension_numbers<[1], [0], [0], [1], [0, 0, 1, 1], [], []>} : vector<16x64xbf16>, vector<64x32xbf16>, vector<16x32xf32> -> vector<16x32xf32>
    %24 = arith.addf %20, %23 : vector<16x32xf32>
    %c0_19 = arith.constant 0 : index
    %c0_20 = arith.constant 0 : index
    %25 = vector.load %arg8[%c0_19, %c0_20] : memref<16x32xf32, #tpu.memory_space<vmem>>, vector<16x32xf32>
    tpu.vector_store %arg8[%c0_19, %c0_20], %24 {strides = array<i32>} : memref<16x32xf32, #tpu.memory_space<vmem>>, vector<16x32xf32>,
    return
  }
  func.func @transform_0(%arg0: i32, %arg1: i32, %arg2: i32) -> (i32, i32) {
    %c0_i32 = arith.constant 0 : i32
    %c0_i32_0 = arith.constant 0 : i32
    return %arg0, %c0_i32 : i32, i32
  }
  func.func @transform_1(%arg0: i32, %arg1: i32, %arg2: i32) -> (i32, i32, i32) {
    %c0_i32 = arith.constant 0 : i32
    %c0_i32_0 = arith.constant 0 : i32
    return %arg1, %arg0, %c0_i32 : i32, i32, i32
  }
  func.func @transform_2(%arg0: i32, %arg1: i32, %arg2: i32) -> (i32, i32, i32) {
    %c0_i32 = arith.constant 0 : i32
    %c0_i32_0 = arith.constant 0 : i32
    return %arg1, %c0_i32, %arg2 : i32, i32, i32
  }
  func.func @transform_3(%arg0: i32, %arg1: i32, %arg2: i32) -> (i32, i32, i32) {
    %c0_i32 = arith.constant 0 : i32
    %c0_i32_0 = arith.constant 0 : i32
    return %arg1, %c0_i32, %arg2 : i32, i32, i32
  }
  func.func @transform_4(%arg0: i32, %arg1: i32, %arg2: i32) -> (i32, i32, i32) {
    %c0_i32 = arith.constant 0 : i32
    %c0_i32_0 = arith.constant 0 : i32
    return %arg1, %arg2, %c0_i32 : i32, i32, i32
  }
  func.func @transform_5(%arg0: i32, %arg1: i32, %arg2: i32) -> (i32, i32) {
    %c0_i32 = arith.constant 0 : i32
    %c0_i32_0 = arith.constant 0 : i32
    return %arg0, %c0_i32 : i32, i32
  }
}

</mosaic_0001>

<bundles_post_ra>
// kernel: moe_forward.1
= control target key start
LH: loop header
LB: loop body
LE: loop exit
PB: predicated region body
PF: predicated region fallthrough
CT: control target
= control target key end

     0   :  { %s846_s18 = smov 0   ;;  %s848_s19 = smov 0   ;;  %s925_s0 = inlined_call_operand.vmem [shape: bf16[16,32], index: 0, kind: input, shape index: {}]   ;;  %s926_s1 = inlined_call_operand.vmem [shape: f32[4,16,1], index: 1, kind: input, shape index: {}]   ;;  %s927_s2 = inlined_call_operand.vmem [shape: bf16[4,32,64], index: 2, kind: input, shape index: {}]   ;;  %s928_s3 = inlined_call_operand.vmem [shape: f32[4,1,64], index: 3, kind: input, shape index: {}]   ;;  %s929_s4 = inlined_call_operand.vmem [shape: bf16[4,64,32], index: 4, kind: input, shape index: {}]   ;;  %s930_s5 = inlined_call_operand.vmem [shape: f32[16,32], index: 5, kind: output, shape index: {}]  }
   0x1   :  { %s850_s20 = smov 0  }
   0x2 LB: > { %s30_s21 = sadd.s32 1, %s806_s19  ;;  %p698_p0 = scmp.ge.s32.totalorder %s810_s20, 1  ;;  %s810_s20 = sphi %s850_s20, %s15_s20   ;;  %s806_s19 = sphi %s848_s19, %s932_s19   ;;  %s802_s18 = sphi %s846_s18, %s931_s18  }
   0x3   : > { %p32_p1 = scmp.ge.s32.totalorder %s30_s21, 4  ;;  %p269_p2 = scmp.lt.s32.totalorder %s810_s20, 5 }
   0x5   : > { %s934_s21 = smov (%p32_p1, %s30_s21), 0  ;;  %p270_p3 = pnand %p698_p0, %p269_p2 }
   0x6   : > { %p336_p4 = scmp.lt.s32.totalorder (!%p270_p3), %s802_s18, 3  ;;  %p376_p5 = scmp.eq.s32.totalorder (!%p270_p3), %s802_s18, 0 }
   0x7   : > { %273 = sbr.rel (%p270_p3) target bundleno = 469 (0x1d5), region = 40 }
   0xe   : > { %s936_s18 = smov (!%p336_p4, %s802_s18), 3  ;;  %381 = sbr.rel (!%p376_p5) target bundleno = 21 (0x15), region = 44 }
   0xf   : > { %s720_s22 = sshll.u32 %s936_s18, 4  ;;  %s358_s25 = scalar_lea.vmem %s928_s3, %s936_s18  ;;  %vm382_vm0 = vcmask (%p376_p5), 261120   ;;  %v812_v0 = vmov (%p376_p5), 0.0  }
  0x10   : > { %s343_s28 = scalar_lea.vmem %s926_s1, %s720_s22  ;;  %s352_s6 = scalar_lea.vmem %s927_s2, %s720_s22  ;;  %383 = vst.msk [vmem:[%s930_s5] sm:$0xff] (%p376_p5), %vm382_vm0, %v812_v0  ;;  %384 = vst.msk [vmem:[%s930_s5 + $0x8] sm:$0xff] (%p376_p5), %vm382_vm0, %v812_v0 }
  0x11   : > { %s722_s7 = sshll.u32 %s936_s18, 5 }
  0x12   : > { %s881_s10 = scalar_lea.vmem %s929_s4, %s722_s7 }
  0x15 PF: > { %v781_v1 = vld [vmem:[%s352_s6] sm:$0xff]   ;;  %v813_v2 = vmov 0.0   ;;  %v782_v3 = vld [vmem:[%s352_s6 + $0x8] sm:$0xff]   ;;  %vm814_vm1 = vmmov 0   ;;  %vm417_vm2 = vcmask 261120   ;;  %v815_v6 = vmov 0  }
  0x16   : > { %732 = vmatprep.subr.bf16.mxu0 %v813_v2  ;;  %740 = vmatprep.subr.bf16.mxu1 %v813_v2  ;;  %v783_v4 = vld [vmem:[%s925_s0] sm:$0xff]   ;;  %v386_v7 = vld [vmem:[%s343_s28 + $0x8] sm:$0xff]  ;;  %v786_v10 = vld [vmem:[%s881_s10 + $0x10] sm:$0xff]   ;;  %vm511_vm3 = vcmask 523264  }
  0x17   : > { %733 = vmatpush3.bf16.msra.mxu0 %v781_v1  ;;  %736 = vmatprep.mubr.msk.bf16.mxu0 %vm814_vm1, %v813_v2  ;;  %v385_v5 = vld [vmem:[%s343_s28] sm:$0xff]  ;;  %v785_v9 = vld [vmem:[%s881_s10 + $0x8] sm:$0xff]   ;;  %v787_v11 = vld [vmem:[%s881_s10 + $0x18] sm:$0xff]  }
  0x18   : > { %734 = vmatprep.subr.bf16.mxu0 %v813_v2  ;;  %748 = vmatprep.mubr.msk.bf16.mxu1 %vm814_vm1, %v813_v2  ;;  %v784_v8 = vld [vmem:[%s881_s10] sm:$0xff]   ;;  %v478_v28 = vld [vmem:[%s930_s5 + $0x8] sm:$0xff] }
  0x19   : > { %780 = vset.pattern.permute.xlu0 %v815_v6  ;;  %741 = vmatpush3.bf16.msra.mxu1 %v784_v8  ;;  %v706_v12 = vld [vmem:[%s358_s25] ss:$0 sm:$0xff] }
  0x1a   : > { %466 = vperm.xlu0 %780, %v385_v5   ;;  %742 = vmatprep.subr.bf16.mxu1 %v813_v2  ;;  %v477_v26 = vld [vmem:[%s930_s5] sm:$0xff] }
  0x1b   : > { %735 = vmatpush3.bf16.msra.mxu0 %v782_v3 }
  0x1d   : > { %743 = vmatpush3.bf16.msra.mxu1 %v785_v9 }
  0x1e   : > { %737 = vmatmul.mubr.msk.bf16.vlgmr.msra.gmra.mrb[0].mxu0 %vm417_vm2, %v783_v4  ;;  %471 = vperm.xlu0 %780, %v386_v7  }
  0x1f   : > { %744 = vmatprep.subr.bf16.mxu1 %v813_v2 }
  0x21   : > { %745 = vmatpush3.bf16.msra.mxu1 %v786_v10 }
  0x22   : > { %746 = vmatprep.subr.bf16.mxu1 %v813_v2 }
  0x25   : > { %747 = vmatpush3.bf16.msra.mxu1 %v787_v11 }
  0x99   : > { %v467_v13 = vpop.permute.xlu0 %466 }
  0x9d   : > { %v472_v22 = vpop.permute.xlu0 %471 }
  0xf1   : > { %v455_v14 = vpop.f32.mrb[0].mxu0 }
  0xf2   : > { %v456_v15 = vadd.f32 %v706_v12, %v455_v14  ;;  %v738_v16 = vpop.f32.mrb[1].mxu0 }
  0xf3   : > { %v458_v17 = vpop.f32.mrb[2].mxu0 }
  0xf4   : > { %v462_v18 = vmax.f32 %v456_v15, 0.0  ;;  %v459_v19 = vadd.f32 %v706_v12, %v458_v17  ;;  %v739_v20 = vpop.f32.mrb[3].mxu0 }
  0xf6   : > { %v463_v21 = vmax.f32 %v459_v19, 0.0  ;;  %v474_v23 = vmul.f32 %v467_v13, %v462_v18 }
  0xf8   : > { %v475_v24 = vmul.f32 %v472_v22, %v463_v21 }
  0xfa   : > { %v476_v25 = vpack.c.bf16 %v475_v24, %v474_v23 }
  0xfc   : > { %749 = vmatmul.mubr.msk.bf16.vlgmr.msra.gmra.mrb[0].mxu1 %vm511_vm3, %v476_v25 }
 0x1cf   : > { %v549_v27 = vpop.f32.mrb[0].mxu1 }
 0x1d0   : > { %v556_v29 = vadd.f32 %v549_v27, %v477_v26  ;;  %v750_v30 = vpop.f32.mrb[1].mxu1 }
 0x1d1   : > { %v552_v31 = vpop.f32.mrb[2].mxu1 }
 0x1d2   : > { %558 = vst.msk [vmem:[%s930_s5] sm:$0xff] %vm417_vm2, %v556_v29  ;;  %v557_v32 = vadd.f32 %v552_v31, %v478_v28  ;;  %v751_v33 = vpop.f32.mrb[3].mxu1 }
 0x1d4   : > { %559 = vst.msk [vmem:[%s930_s5 + $0x8] sm:$0xff] %vm417_vm2, %v557_v32 }
 0x1d5 PF: > { %s15_s20 = sadd.s32 1, %s810_s20   ;;  %s931_s18 = smov %s806_s19 }
 0x1d6   : > { %p12_p6 = scmp.ge.s32.totalorder %s15_s20, 6   ;;  %s932_s19 = smov %s934_s21 }
 0x1d8   :  { %14 = sbr.rel (!%p12_p6) target bundleno = 2 (0x2), region = 86 }

</bundles_post_ra>
